<compile_context>
chip_gen: v7x
topology: tpu7x:2x2x1
jax: 0.10.0
libtpu: 0.0.40
codegen_flags: <defaults>
</compile_context>

<pallas_src>
import functools

import jax
import jax.numpy as jnp
from jax.experimental import pallas as pl
from jax.experimental.pallas import tpu as pltpu


def _nsp_kernel(x_ref, w_ref, b_ref, o_ref, *, cast_operands_to_bf16):
    x = x_ref[...]                       # (TB, H), streamed
    w = w_ref[...]                       # (H, 2), resident, pre-transposed
    if cast_operands_to_bf16:
        # v5e relief: bf16 MXU operands, f32 accumulation kept below.
        x = x.astype(jnp.bfloat16)
        w = w.astype(jnp.bfloat16)
    acc = jnp.dot(x, w, preferred_element_type=jnp.float32)   # (TB, 2), f32
    o_ref[...] = (acc + b_ref[...]).astype(o_ref.dtype)


def _physical_vmem_bytes():
    """Physical VMEM of the current chip; conservative fallback (v7x per-TC)."""
    try:
        return int(pltpu.get_tpu_info().vmem_capacity_bytes)
    except Exception:
        return 64 * 1024 * 1024


def _pick_batch_tile(batch, hidden, itemsize, per_buffer_budget):
    """Largest batch tile (multiple of 8) whose double-buffered X fits the
    generation-aware per-buffer budget; forces >= 2 grid steps on batches
    >= 16 so v7x megacore can split the work across its two TensorCores."""
    if batch <= 8:
        return batch                     # single full-extent block (always legal)
    rows = per_buffer_budget // max(1, hidden * itemsize)
    rows = max(8, (rows // 8) * 8)
    tb = min(rows, batch)
    if batch >= 16 and -(-batch // tb) < 2:
        tb = max(8, ((-(-batch // 2)) // 8) * 8)
    tb = max(8, (tb // 8) * 8)
    return min(tb, batch)


def next_sentence_pred(x, weight, bias, *, tb=None, out_dtype=None, mxu_bf16=False):
    """NSP head forward: x @ weight.T + bias.

    x:        (B, H)  -- pass bf16 X for the HBM-bandwidth win (no wrapper cast).
    weight:   (2, H)  -- PyTorch nn.Linear layout.
    bias:     (2,)
    tb:       optional batch-tile override.
    out_dtype: output dtype (default: x.dtype).
    mxu_bf16: cast MXU operands to bf16 *inside* the kernel (f32 accumulation
              kept); keeps v5e's N-padded f32 matmul off the critical path.
    """
    B, H = x.shape
    if out_dtype is None:
        out_dtype = x.dtype

    # W is tiny (2*H): pre-transpose once so the resident MXU RHS is fed in
    # its natural (K, N) layout.  X is deliberately NOT cast/copied here --
    # a wrapper-side cast would add HBM traffic instead of saving it.
    w_t = weight.T
    if jnp.dtype(x.dtype).itemsize < jnp.dtype(w_t.dtype).itemsize:
        w_t = w_t.astype(x.dtype)        # negligible: 2*H elements
    b2d = bias.reshape(1, 2).astype(jnp.float32)

    x_item = jnp.dtype(x.dtype).itemsize
    w_item = jnp.dtype(w_t.dtype).itemsize
    o_item = jnp.dtype(out_dtype).itemsize

    physical_vmem = _physical_vmem_bytes()
    per_buffer_budget = physical_vmem // 3      # ~42 MiB on 128 MiB chips, ~21 MiB on v7x

    if tb is None:
        tb = _pick_batch_tile(B, H, x_item, per_buffer_budget)
    grid = (pl.cdiv(B, tb),)

    # Double-buffered X + out, resident W + bias, plus slack; keep headroom
    # below physical VMEM on every generation.
    footprint = (2 * tb * H * x_item + 2 * tb * 2 * o_item
                 + H * 2 * w_item + 2 * 4)
    vmem_limit = int(min(int(physical_vmem * 0.9),
                         max(footprint + (8 << 20), 32 << 20)))

    cost = pl.CostEstimate(
        flops=4 * B * H,                                     # (B,H)x(H,2) MACs
        bytes_accessed=int(B * H * x_item + H * 2 * w_item + 2 * 4
                           + B * 2 * o_item),
        transcendentals=0,
    )

    kernel = functools.partial(_nsp_kernel,
                               cast_operands_to_bf16=bool(mxu_bf16))

    return pl.pallas_call(
        kernel,
        out_shape=jax.ShapeDtypeStruct((B, 2), out_dtype),
        grid_spec=pltpu.PrefetchScalarGridSpec(
            num_scalar_prefetch=0,
            grid=grid,
            in_specs=[
                pl.BlockSpec((tb, H), lambda i: (i, 0)),     # X: streamed by batch tile
                pl.BlockSpec((H, 2), lambda i: (0, 0)),      # W^T: resident
                pl.BlockSpec((1, 2), lambda i: (0, 0)),      # bias: resident
            ],
            out_specs=pl.BlockSpec((tb, 2), lambda i: (i, 0)),
        ),
        compiler_params=pltpu.CompilerParams(
            dimension_semantics=("parallel",),               # megacore on v7x
            vmem_limit_bytes=vmem_limit,
        ),
        cost_estimate=cost,
    )(x, w_t, b2d)


if __name__ == "__main__":
    key = jax.random.PRNGKey(0)
    k_x, k_w, k_b, k_x2 = jax.random.split(key, 4)

    batch, hidden = 8, 32               # small shapes implied by the forward
    x = jax.random.normal(k_x, (batch, hidden), dtype=jnp.float32)

    # Deterministic parameter init (PyTorch Linear-style uniform bound).
    bound = 1.0 / (hidden ** 0.5)
    weight = jax.random.uniform(k_w, (2, hidden), jnp.float32, -bound, bound)
    bias = jax.random.uniform(k_b, (2,), jnp.float32, -bound, bound)

    # 1) Exact-semantics f32 path (single full-extent block at this size).
    out = next_sentence_pred(x, weight, bias)
    jax.block_until_ready(out)
    ref = x @ weight.T + bias
    assert out.shape == (batch, 2) and out.dtype == jnp.float32
    assert jnp.allclose(out, ref, atol=1e-5, rtol=1e-5)

    # 2) Multi-tile path with a ragged tail: auto tile pick forces >=2 grid
    #    steps (v7x megacore) and exercises masked last-block stores.
    batch2 = 20
    x2 = jax.random.normal(k_x2, (batch2, hidden), dtype=jnp.float32)
    out2 = next_sentence_pred(x2, weight, bias)
    jax.block_until_ready(out2)
    ref2 = x2 @ weight.T + bias
    assert out2.shape == (batch2, 2)
    assert jnp.allclose(out2, ref2, atol=1e-5, rtol=1e-5)

    # 3) bf16-stored X (the real bandwidth win: the kernel reads bf16 straight
    #    from HBM -- no wrapper-side cast), f32 accumulation + f32 output.
    x2_bf16 = x2.astype(jnp.bfloat16)   # pretend upstream stores X in bf16
    out_bf16 = next_sentence_pred(x2_bf16, weight, bias, out_dtype=jnp.float32)
    jax.block_until_ready(out_bf16)
    assert out_bf16.dtype == jnp.float32
    assert jnp.allclose(out_bf16, ref2, atol=5e-2, rtol=5e-2)

    # 4) f32 X with in-kernel bf16 MXU operands (v5e MXU-relief path),
    #    f32 accumulation and output.
    out_mxu = next_sentence_pred(x2, weight, bias, mxu_bf16=True)
    jax.block_until_ready(out_mxu)
    assert jnp.allclose(out_mxu, ref2, atol=5e-2, rtol=5e-2)

    print("KERNEL_OK")
</pallas_src>

<mosaic_0001>
module attributes {stable_mosaic.version = 11 : i64} {
  func.func @_nsp_kernel(%arg0: i32, %arg1: memref<8x32xf32, #tpu.memory_space<vmem>>, %arg2: memref<32x2xf32, #tpu.memory_space<vmem>>, %arg3: memref<1x2xf32, #tpu.memory_space<vmem>>, %arg4: memref<8x2xf32, #tpu.memory_space<vmem>>) attributes {dimension_semantics = [#tpu.dimension_semantics<parallel>], iteration_bounds = array<i64: 1>, scalar_prefetch = 0 : i64, scratch_operands = 0 : i64, tpu.core_type = #tpu.core_type<tc>, window_params = [{transform_indices = @transform_0, window_bounds = array<i64: 8, 32>}, {pipeline_mode = #tpu.pipeline_mode<synchronous>, transform_indices = @transform_1, window_bounds = array<i64: 32, 2>}, {pipeline_mode = #tpu.pipeline_mode<synchronous>, transform_indices = @transform_2, window_bounds = array<i64: 1, 2>}, {transform_indices = @transform_3, window_bounds = array<i64: 8, 2>}]} {
    %c0 = arith.constant 0 : index
    %c0_0 = arith.constant 0 : index
    %0 = vector.load %arg1[%c0, %c0_0] : memref<8x32xf32, #tpu.memory_space<vmem>>, vector<8x32xf32>
    %c0_1 = arith.constant 0 : index
    %c0_2 = arith.constant 0 : index
    %1 = vector.load %arg2[%c0_1, %c0_2] : memref<32x2xf32, #tpu.memory_space<vmem>>, vector<32x2xf32>
    %cst = arith.constant dense<0.000000e+00> : vector<8x2xf32>
    %2 = tpu.matmul %0, %1, %cst {dimension_numbers = #tpu.dot_dimension_numbers<[1], [0], [0], [1], [0, 0, 1, 1], [], []>} : vector<8x32xf32>, vector<32x2xf32>, vector<8x2xf32> -> vector<8x2xf32>
    %c0_3 = arith.constant 0 : index
    %c0_4 = arith.constant 0 : index
    %3 = vector.load %arg3[%c0_3, %c0_4] : memref<1x2xf32, #tpu.memory_space<vmem>>, vector<1x2xf32>
    %4 = vector.broadcast %3 : vector<1x2xf32> to vector<8x2xf32>
    %5 = arith.addf %2, %4 : vector<8x2xf32>
    %c0_5 = arith.constant 0 : index
    %c0_6 = arith.constant 0 : index
    %6 = vector.load %arg4[%c0_5, %c0_6] : memref<8x2xf32, #tpu.memory_space<vmem>>, vector<8x2xf32>
    tpu.vector_store %arg4[%c0_5, %c0_6], %5 {strides = array<i32>} : memref<8x2xf32, #tpu.memory_space<vmem>>, vector<8x2xf32>,
    return
  }
  func.func @transform_0(%arg0: i32) -> (i32, i32) {
    %c0_i32 = arith.constant 0 : i32
    %c0_i32_0 = arith.constant 0 : i32
    return %arg0, %c0_i32 : i32, i32
  }
  func.func @transform_1(%arg0: i32) -> (i32, i32) {
    %c0_i32 = arith.constant 0 : i32
    %c0_i32_0 = arith.constant 0 : i32
    %c0_i32_1 = arith.constant 0 : i32
    return %c0_i32, %c0_i32_0 : i32, i32
  }
  func.func @transform_2(%arg0: i32) -> (i32, i32) {
    %c0_i32 = arith.constant 0 : i32
    %c0_i32_0 = arith.constant 0 : i32
    %c0_i32_1 = arith.constant 0 : i32
    return %c0_i32, %c0_i32_0 : i32, i32
  }
  func.func @transform_3(%arg0: i32) -> (i32, i32) {
    %c0_i32 = arith.constant 0 : i32
    %c0_i32_0 = arith.constant 0 : i32
    return %arg0, %c0_i32 : i32, i32
  }
}

</mosaic_0001>

<bundles_post_ra>
// kernel: tpu_custom_call.1
= control target key start
LH: loop header
LB: loop body
LE: loop exit
PB: predicated region body
PF: predicated region fallthrough
CT: control target
= control target key end

     0   :  { %v133_v0 = vmov 0.0|0.0   ;;  %vm134_vm0 = vmmov 0   ;;  %v135_v4 = vmov 0.0   ;;  %vm26_vm1 = vcmask 261120   ;;  %s177_s1 = inlined_call_operand.vmem [shape: f32[32,2], index: 1, kind: input, shape index: {}]   ;;  %s178_s0 = inlined_call_operand.vmem [shape: f32[8,32], index: 0, kind: input, shape index: {}]   ;;  %s179_s2 = inlined_call_operand.vmem [shape: f32[1,2], index: 2, kind: input, shape index: {}]   ;;  %s180_s3 = inlined_call_operand.vmem [shape: f32[8,2], index: 3, kind: output, shape index: {}]  }
   0x1   :  { %124 = vmatprep.subr.bf16.mxu0 %v133_v0  ;;  %v15_v1 = vld [vmem:[%s177_s1] sm:$0xff]  ;;  %v16_v2 = vld [vmem:[%s177_s1 + $0x8] sm:$0xff]  ;;  %v17_v3 = vld [vmem:[%s177_s1 + $0x10] sm:$0xff]  ;;  %121 = vmatprep.mubr.msk.f32.mxu0 %vm134_vm0, %v135_v4  ;;  %vm100_vm2 = vcmask 15360  }
   0x2   :  { %v125_v5 = vpack.c.bf16 %v16_v2, %v15_v1  ;;  %v18_v6 = vld [vmem:[%s177_s1 + $0x18] sm:$0xff]  ;;  %v14_v8 = vld [vmem:[%s178_s0] sm:$0xff] }
   0x3   :  { %v128_v7 = vpack.c.bf16 %v18_v6, %v17_v3  ;;  %v106_v9 = vld [vmem:[%s179_s2] ss:$0 sm:$0xff] }
   0x4   :  { %126 = vmatpush3.bf16.msra.mxu0 %v125_v5 }
   0x5   :  { %127 = vmatprep.subr.bf16.mxu0 %v133_v0 }
   0x8   :  { %129 = vmatpush3.bf16.msra.mxu0 %v128_v7 }
   0xb   :  { %122 = vmatmul.mubr.msk.f32.vlgmr.msra.gmra.mrb[0].mxu0 %vm26_vm1, %v14_v8 }
  0xde   :  { %v96_v10 = vpop.f32.mrb[0].mxu0 }
  0xdf   :  { %v97_v11 = vadd.f32 %v106_v9, %v96_v10  ;;  %v123_v12 = vpop.f32.mrb[1].mxu0 }
  0xe1   :  { %101 = vst.msk [vmem:[%s180_s3] sm:$0xff] %vm100_vm2, %v97_v11 }

</bundles_post_ra>
